<compile_context>
chip_gen: v7x
topology: tpu7x:2x2x1
jax: 0.10.0
libtpu: 0.0.40
codegen_flags: <defaults>
</compile_context>

<pallas_src>
import functools

import jax
import jax.numpy as jnp
from jax.experimental import pallas as pl
from jax.experimental.pallas import tpu as pltpu


def _round_up(x, m):
    return ((x + m - 1) // m) * m


# --------------------------------------------------------------------------
# Pallas kernels
# --------------------------------------------------------------------------
def _erf_approx(x):
    """Abramowitz & Stegun 7.1.26 polynomial erf (|err| <= 1.5e-7). VPU + EUP exp."""
    a1, a2, a3, a4, a5 = 0.254829592, -0.284496736, 1.421413741, -1.453152027, 1.061405429
    p = 0.3275911
    s = jnp.where(x >= 0.0, 1.0, -1.0)
    ax = jnp.abs(x)
    t = 1.0 / (1.0 + p * ax)
    poly = ((((a5 * t + a4) * t + a3) * t + a2) * t + a1) * t
    return s * (1.0 - poly * jnp.exp(-ax * ax))


def _make_mm_kernel(act, has_res):
    """Tiled matmul: bf16 operands, f32 accumulation, fused f32 epilogue."""
    def kernel(*refs):
        if has_res:
            a_ref, b_ref, s_ref, c_ref, r_ref, o_ref, acc_ref = refs
        else:
            a_ref, b_ref, s_ref, c_ref, o_ref, acc_ref = refs
            r_ref = None

        @pl.when(pl.program_id(2) == 0)
        def _():
            acc_ref[...] = jnp.zeros_like(acc_ref)

        acc_ref[...] += jnp.dot(a_ref[...], b_ref[...],
                                preferred_element_type=jnp.float32)

        @pl.when(pl.program_id(2) == pl.num_programs(2) - 1)
        def _():
            r = acc_ref[...] * s_ref[...] + c_ref[...]
            if act == "relu":
                r = jnp.maximum(r, 0.0)
            elif act == "gelu":
                r = 0.5 * r * (1.0 + _erf_approx(r * 0.7071067811865476))
            if has_res:
                r = r + r_ref[...]
            o_ref[...] = r.astype(o_ref.dtype)

    return kernel


def _ln_kernel(x_ref, g_ref, b_ref, o_ref):
    x = x_ref[...]
    mean = jnp.mean(x, axis=-1, keepdims=True)
    xc = x - mean
    var = jnp.mean(xc * xc, axis=-1, keepdims=True)
    o_ref[...] = xc * jax.lax.rsqrt(var + 1e-6) * g_ref[...] + b_ref[...]


def _make_dw_kernel(H):
    """Depthwise 7x7 tap accumulation; input block is (7 W-shifts, 1, H+6, W, ct)."""
    def kernel(x_ref, w_ref, b_ref, o_ref):
        acc = jnp.zeros(o_ref.shape, jnp.float32)
        for dj in range(7):            # W shift (pre-built view)
            for di in range(7):        # H shift (untiled-axis slice in VMEM)
                acc = acc + x_ref[dj, :, di:di + H, :, :] * w_ref[di * 7 + dj, 0, :]
        o_ref[...] = acc + b_ref[0, :]
    return kernel


def _lerp_rows_kernel(lo_ref, hi_ref, xlo_ref, xhi_ref, fr_ref, o_ref):
    f = fr_ref[pl.program_id(0)]
    xlo = xlo_ref[...]
    o_ref[...] = xlo + (xhi_ref[...] - xlo) * f


# --------------------------------------------------------------------------
# Pallas wrappers
# --------------------------------------------------------------------------
@functools.partial(jax.jit, static_argnames=("act", "out_dtype"))
def pallas_matmul(a, b, scale, bias, residual=None, act=None, out_dtype=jnp.float32):
    """out = act((a @ b) * scale + bias) [+ residual].

    a:(M,K), b:(K,N) are fed to the MXU in bf16; accumulation and epilogue are f32.
    scale,bias:(N,) f32; residual:(M,N) f32 (optional, added after the activation).
    """
    M, K = a.shape
    _, N = b.shape

    tm = 256 if M > 256 else _round_up(M, 16)
    padM = _round_up(M, tm)
    padN0 = _round_up(N, 128)
    tn = 256 if padN0 >= 256 else 128
    padN = _round_up(N, tn)
    padK0 = _round_up(K, 128)
    # collapse the K grid for small-M (per-step-overhead-bound) matmuls
    kmax = 4096 if padM <= 128 else 2048
    if padK0 <= kmax:
        tk, padK = padK0, padK0
    else:
        nk = -(-padK0 // kmax)
        tk = _round_up(-(-padK0 // nk), 128)
        padK = nk * tk

    a_p = jnp.pad(a.astype(jnp.bfloat16), ((0, padM - M), (0, padK - K)))
    b_p = jnp.pad(b.astype(jnp.bfloat16), ((0, padK - K), (0, padN - N)))
    s_p = jnp.pad(scale.astype(jnp.float32), ((0, padN - N),)).reshape(1, padN)
    c_p = jnp.pad(bias.astype(jnp.float32), ((0, padN - N),)).reshape(1, padN)

    in_specs = [
        pl.BlockSpec((tm, tk), lambda i, j, k: (i, k)),
        pl.BlockSpec((tk, tn), lambda i, j, k: (k, j)),
        pl.BlockSpec((1, tn), lambda i, j, k: (0, j)),
        pl.BlockSpec((1, tn), lambda i, j, k: (0, j)),
    ]
    args = [a_p, b_p, s_p, c_p]
    has_res = residual is not None
    if has_res:
        r_p = jnp.pad(residual.astype(jnp.float32), ((0, padM - M), (0, padN - N)))
        in_specs.append(pl.BlockSpec((tm, tn), lambda i, j, k: (i, j)))
        args.append(r_p)

    out = pl.pallas_call(
        _make_mm_kernel(act, has_res),
        out_shape=jax.ShapeDtypeStruct((padM, padN), out_dtype),
        grid_spec=pltpu.PrefetchScalarGridSpec(
            num_scalar_prefetch=0,
            grid=(padM // tm, padN // tn, padK // tk),
            in_specs=in_specs,
            out_specs=pl.BlockSpec((tm, tn), lambda i, j, k: (i, j)),
            scratch_shapes=[pltpu.VMEM((tm, tn), jnp.float32)],
        ),
        compiler_params=pltpu.CompilerParams(
            dimension_semantics=("parallel", "parallel", "arbitrary")),
    )(*args)
    return out[:M, :N]


@jax.jit
def pallas_layernorm(x, gamma, beta):
    """LayerNorm over the last axis, eps=1e-6. x: (M, C) f32."""
    M, C = x.shape
    tm = 256 if M > 256 else _round_up(M, 8)
    padM = _round_up(M, tm)
    x_p = jnp.pad(x.astype(jnp.float32), ((0, padM - M), (0, 0)))
    out = pl.pallas_call(
        _ln_kernel,
        out_shape=jax.ShapeDtypeStruct((padM, C), jnp.float32),
        grid_spec=pltpu.PrefetchScalarGridSpec(
            num_scalar_prefetch=0,
            grid=(padM // tm,),
            in_specs=[
                pl.BlockSpec((tm, C), lambda i: (i, 0)),
                pl.BlockSpec((1, C), lambda i: (0, 0)),
                pl.BlockSpec((1, C), lambda i: (0, 0)),
            ],
            out_specs=pl.BlockSpec((tm, C), lambda i: (i, 0)),
        ),
        compiler_params=pltpu.CompilerParams(dimension_semantics=("parallel",)),
    )(x_p, gamma.reshape(1, C).astype(jnp.float32),
      beta.reshape(1, C).astype(jnp.float32))
    return out[:M]


@jax.jit
def pallas_depthwise7x7(x, w, b):
    """Depthwise 7x7 conv, padding=3, stride=1 (+ per-channel bias). NHWC, f32.

    Channel-tiled (ct=128) grid over (batch, C-tiles); only 7 W-shifted views are
    materialized (7x activation, vs 49x for a full tap stack); H shifts are sliced
    in-kernel along an untiled axis. Keeps per-buffer VMEM ~1 MiB on all chips.
    """
    N, H, W, C = x.shape
    xp = jnp.pad(x.astype(jnp.float32), ((0, 0), (3, 3), (3, 3), (0, 0)))
    x_sh = jnp.stack([xp[:, :, j:j + W, :] for j in range(7)], axis=0)  # (7,N,H+6,W,C)
    ct = 128 if C % 128 == 0 else C
    out = pl.pallas_call(
        _make_dw_kernel(H),
        out_shape=jax.ShapeDtypeStruct((N, H, W, C), jnp.float32),
        grid_spec=pltpu.PrefetchScalarGridSpec(
            num_scalar_prefetch=0,
            grid=(N, C // ct),
            in_specs=[
                pl.BlockSpec((7, 1, H + 6, W, ct), lambda n, c: (0, n, 0, 0, c)),
                pl.BlockSpec((49, 1, ct), lambda n, c: (0, 0, c)),
                pl.BlockSpec((1, ct), lambda n, c: (0, c)),
            ],
            out_specs=pl.BlockSpec((1, H, W, ct), lambda n, c: (n, 0, 0, c)),
        ),
        compiler_params=pltpu.CompilerParams(
            dimension_semantics=("parallel", "parallel")),
    )(x_sh, w.reshape(49, 1, C).astype(jnp.float32),
      b.reshape(1, C).astype(jnp.float32))
    return out


@jax.jit
def _resize_rows(x, lo, hi, frac):
    """out[:, o] = lerp(x[:, lo[o]], x[:, hi[o]], frac[o]) along axis 1 (NHWC, C on lanes)."""
    N, H, W, C = x.shape
    Ho = lo.shape[0]
    return pl.pallas_call(
        _lerp_rows_kernel,
        out_shape=jax.ShapeDtypeStruct((N, Ho, W, C), jnp.float32),
        grid_spec=pltpu.PrefetchScalarGridSpec(
            num_scalar_prefetch=2,
            grid=(Ho,),
            in_specs=[
                pl.BlockSpec((N, 1, W, C), lambda o, lo, hi: (0, lo[o], 0, 0)),
                pl.BlockSpec((N, 1, W, C), lambda o, lo, hi: (0, hi[o], 0, 0)),
                pl.BlockSpec(memory_space=pltpu.MemorySpace.SMEM),
            ],
            out_specs=pl.BlockSpec((N, 1, W, C), lambda o, lo, hi: (0, o, 0, 0)),
        ),
        compiler_params=pltpu.CompilerParams(dimension_semantics=("arbitrary",)),
    )(lo, hi, x, x, frac)


# --------------------------------------------------------------------------
# Plain-JAX glue (im2col, layout plumbing)
# --------------------------------------------------------------------------
def im2col(x, kh, kw, stride=1, padding=0, dilation=1):
    N, H, W, C = x.shape
    xp = jnp.pad(x, ((0, 0), (padding, padding), (padding, padding), (0, 0)))
    Ho = (H + 2 * padding - dilation * (kh - 1) - 1) // stride + 1
    Wo = (W + 2 * padding - dilation * (kw - 1) - 1) // stride + 1
    cols = []
    for i in range(kh):
        for j in range(kw):
            cols.append(xp[:, i * dilation: i * dilation + (Ho - 1) * stride + 1: stride,
                           j * dilation: j * dilation + (Wo - 1) * stride + 1: stride, :])
    patches = jnp.stack(cols, axis=-2)  # (N, Ho, Wo, kh*kw, C)
    return patches.reshape(N * Ho * Wo, kh * kw * C), (N, Ho, Wo)


def conv2d(x, w, stride=1, padding=0, dilation=1, scale=None, bias=None, act=None):
    """x: NHWC f32, w: (kh, kw, Cin, Cout) bf16. Fused per-channel scale/bias (+act)."""
    kh, kw, cin, cout = w.shape
    cols, (N, Ho, Wo) = im2col(x.astype(jnp.bfloat16), kh, kw, stride, padding, dilation)
    if scale is None:
        scale = jnp.ones((cout,), jnp.float32)
    if bias is None:
        bias = jnp.zeros((cout,), jnp.float32)
    out = pallas_matmul(cols, w.reshape(kh * kw * cin, cout), scale, bias, act=act)
    return out.reshape(N, Ho, Wo, cout)


def _interp_coeffs(in_size, out_size):
    """align_corners=True linear interpolation source indices and weights."""
    if in_size == 1 or out_size == 1:
        z = jnp.zeros((out_size,), jnp.int32)
        return z, z, jnp.zeros((out_size,), jnp.float32)
    idx = jnp.arange(out_size, dtype=jnp.float32) * ((in_size - 1) / (out_size - 1))
    lo = jnp.clip(jnp.floor(idx).astype(jnp.int32), 0, in_size - 2)
    frac = idx - lo.astype(jnp.float32)
    return lo, lo + 1, frac


def bilinear_resize(x, Ho, Wo):
    """Bilinear resize (align_corners=True) as two separable lane-dense row-lerp passes."""
    N, H, W, C = x.shape
    x = x.astype(jnp.float32)
    if Ho != H:
        x = _resize_rows(x, *_interp_coeffs(H, Ho))
    if Wo != W:
        x = jnp.transpose(x, (0, 2, 1, 3))
        x = _resize_rows(x, *_interp_coeffs(W, Wo))
        x = jnp.transpose(x, (0, 2, 1, 3))
    return x


# --------------------------------------------------------------------------
# Model building blocks
# --------------------------------------------------------------------------
def layernorm2d(x, g, b):
    N, H, W, C = x.shape
    return pallas_layernorm(x.reshape(N * H * W, C), g, b).reshape(N, H, W, C)


@jax.jit
def cn_block(x, p):
    """torchvision CNBlock (eval): dw7x7 -> LN -> FC(4x) -> GELU -> FC -> *ls + x."""
    N, H, W, C = x.shape
    h = pallas_depthwise7x7(x, p["dw_w"], p["dw_b"])
    h = pallas_layernorm(h.reshape(N * H * W, C), p["ln_g"], p["ln_b"])
    # GELU fused into fc1's epilogue; fc1 emits bf16 to feed the fc2 MXU directly.
    h = pallas_matmul(h, p["fc1_w"], jnp.ones((4 * C,), jnp.float32), p["fc1_b"],
                      act="gelu", out_dtype=jnp.bfloat16)
    # layer_scale folded into fc2 scale/bias; residual add fused into the epilogue.
    out = pallas_matmul(h, p["fc2_w"], p["layer_scale"],
                        p["fc2_b"] * p["layer_scale"],
                        residual=x.reshape(N * H * W, C))
    return out.reshape(N, H, W, C)        # stochastic depth = identity (eval)


def cn_stage(x, blocks):
    for blk in blocks:
        x = cn_block(x, blk)
    return x


def downsample(x, p):
    x = layernorm2d(x, p["ln_g"], p["ln_b"])
    return conv2d(x, p["w"], stride=2, padding=0, bias=p["b"])


def conv_bn_act(x, p):
    return conv2d(x, p["w"], stride=1, padding=1, scale=p["s"], bias=p["b"], act="relu")


def decoder_block(x, ps):
    for p in ps:
        x = conv_bn_act(x, p)
    return x


def up_block(x, p):
    N, H, W, C = x.shape
    x = bilinear_resize(x, 2 * H, 2 * W)
    return conv2d(x, p["w"], bias=p["b"])          # 1x1 conv


def unet_forward(x_nchw, P):
    x = jnp.transpose(x_nchw, (0, 2, 3, 1)).astype(jnp.float32)  # NCHW -> NHWC

    # encoder (ConvNeXt-Base features)
    e = conv2d(x, P["stem_w"], stride=4, padding=0, bias=P["stem_b"])
    e = layernorm2d(e, P["stem_ln_g"], P["stem_ln_b"])
    e1 = cn_stage(e, P["stages"][0])                                  # C=128,  H/4
    e2 = cn_stage(downsample(e1, P["downs"][0]), P["stages"][1])      # C=256,  H/8
    e3 = cn_stage(downsample(e2, P["downs"][1]), P["stages"][2])      # C=512,  H/16
    e4 = cn_stage(downsample(e3, P["downs"][2]), P["stages"][3])      # C=1024, H/32

    # dilated bottleneck
    bp = P["bottleneck"]
    bo = conv2d(e4, bp["w1"], padding=2, dilation=2, scale=bp["s1"], bias=bp["b1"], act="relu")
    bo = conv2d(bo, bp["w2"], padding=2, dilation=2, scale=bp["s2"], bias=bp["b2"], act="relu")
    b = jnp.concatenate([e4, bo], axis=-1)                            # C=2048

    # decoder
    d3 = decoder_block(jnp.concatenate([up_block(b, P["up3"]), e3], axis=-1), P["dec3"])
    d2 = decoder_block(jnp.concatenate([up_block(d3, P["up2"]), e2], axis=-1), P["dec2"])
    d1 = decoder_block(jnp.concatenate([up_block(d2, P["up1"]), e1], axis=-1), P["dec1"])

    H, W = x.shape[1], x.shape[2]
    f = bilinear_resize(d1, H, W)
    out = conv2d(f, P["outconv_w"], bias=P["outconv_b"])
    return jnp.transpose(out, (0, 3, 1, 2))                           # back to NCHW


# --------------------------------------------------------------------------
# Deterministic parameter initialization (matmul weights pre-cast to bf16)
# --------------------------------------------------------------------------
class Init:
    def __init__(self, seed=0):
        self.key = jax.random.PRNGKey(seed)

    def normal(self, shape, std=0.02):
        self.key, k = jax.random.split(self.key)
        return std * jax.random.normal(k, shape, jnp.float32)

    def uniform(self, shape, lo, hi):
        self.key, k = jax.random.split(self.key)
        return jax.random.uniform(k, shape, jnp.float32, lo, hi)


def init_bn_fold(init, c, eps=1e-5):
    gamma = init.uniform((c,), 0.5, 1.5)
    beta = init.normal((c,), 0.1)
    mean = init.normal((c,), 0.1)
    var = init.uniform((c,), 0.5, 1.5)
    scale = gamma / jnp.sqrt(var + eps)
    shift = beta - mean * scale
    return scale, shift


def init_cnblock(init, dim):
    return dict(
        dw_w=init.normal((7, 7, dim), 0.05),
        dw_b=init.normal((dim,), 0.05),
        ln_g=init.uniform((dim,), 0.8, 1.2),
        ln_b=init.normal((dim,), 0.05),
        fc1_w=init.normal((dim, 4 * dim), 0.02).astype(jnp.bfloat16),
        fc1_b=init.normal((4 * dim,), 0.02),
        fc2_w=init.normal((4 * dim, dim), 0.02).astype(jnp.bfloat16),
        fc2_b=init.normal((dim,), 0.02),
        layer_scale=jnp.full((dim,), 1e-6, jnp.float32),  # torchvision layer_scale init
    )


def init_convbnact(init, cin, cout):
    w = init.normal((3, 3, cin, cout), 0.02).astype(jnp.bfloat16)
    s, b = init_bn_fold(init, cout)
    return dict(w=w, s=s, b=b)


def make_params(n_classes, seed=0):
    init = Init(seed)
    dims = [128, 256, 512, 1024]
    depths = [3, 3, 27, 3]     # ConvNeXt-Base
    P = dict(
        stem_w=init.normal((4, 4, 3, 128), 0.05).astype(jnp.bfloat16),
        stem_b=init.normal((128,), 0.05),
        stem_ln_g=init.uniform((128,), 0.8, 1.2),
        stem_ln_b=init.normal((128,), 0.05),
        stages=[[init_cnblock(init, d) for _ in range(n)] for d, n in zip(dims, depths)],
        downs=[dict(ln_g=init.uniform((dims[i],), 0.8, 1.2),
                    ln_b=init.normal((dims[i],), 0.05),
                    w=init.normal((2, 2, dims[i], dims[i + 1]), 0.05).astype(jnp.bfloat16),
                    b=init.normal((dims[i + 1],), 0.05)) for i in range(3)],
    )
    s1, b1 = init_bn_fold(init, 1024)
    s2, b2 = init_bn_fold(init, 1024)
    P["bottleneck"] = dict(w1=init.normal((3, 3, 1024, 1024), 0.02).astype(jnp.bfloat16),
                           s1=s1, b1=b1,
                           w2=init.normal((3, 3, 1024, 1024), 0.02).astype(jnp.bfloat16),
                           s2=s2, b2=b2)
    P["up3"] = dict(w=init.normal((1, 1, 2048, 512), 0.02).astype(jnp.bfloat16),
                    b=init.normal((512,), 0.02))
    P["dec3"] = [init_convbnact(init, 1024, 512),
                 init_convbnact(init, 512, 512),
                 init_convbnact(init, 512, 512)]
    P["up2"] = dict(w=init.normal((1, 1, 512, 256), 0.02).astype(jnp.bfloat16),
                    b=init.normal((256,), 0.02))
    P["dec2"] = [init_convbnact(init, 512, 256),
                 init_convbnact(init, 256, 256),
                 init_convbnact(init, 256, 256)]
    P["up1"] = dict(w=init.normal((1, 1, 256, 128), 0.02).astype(jnp.bfloat16),
                    b=init.normal((128,), 0.02))
    P["dec1"] = [init_convbnact(init, 256, 128),
                 init_convbnact(init, 128, 128),
                 init_convbnact(init, 128, 128)]
    P["outconv_w"] = init.normal((1, 1, 128, n_classes), 0.05).astype(jnp.bfloat16)
    P["outconv_b"] = init.normal((n_classes,), 0.05)
    return P


# --------------------------------------------------------------------------
if __name__ == "__main__":
    n_classes = 3
    # smallest spatial size consistent with the /32 encoder stride and bilinear ups
    x = jax.random.normal(jax.random.PRNGKey(0), (2, 3, 64, 64), jnp.float32)
    params = make_params(n_classes, seed=0)

    out = unet_forward(x, params)
    out = jax.block_until_ready(out)
    assert out.shape == (2, n_classes, 64, 64), out.shape
    print("KERNEL_OK")
</pallas_src>

<mosaic_0001>
module attributes {stable_mosaic.version = 11 : i64} {
  func.func @kernel(%arg0: i32, %arg1: i32, %arg2: i32, %arg3: memref<256x128xbf16, #tpu.memory_space<vmem>>, %arg4: memref<128x128xbf16, #tpu.memory_space<vmem>>, %arg5: memref<1x128xf32, #tpu.memory_space<vmem>>, %arg6: memref<1x128xf32, #tpu.memory_space<vmem>>, %arg7: memref<256x128xf32, #tpu.memory_space<vmem>>, %arg8: memref<256x128xf32, #tpu.memory_space<vmem>>) attributes {dimension_semantics = [#tpu.dimension_semantics<parallel>, #tpu.dimension_semantics<parallel>, #tpu.dimension_semantics<arbitrary>], iteration_bounds = array<i64: 2, 1, 1>, scalar_prefetch = 0 : i64, scratch_operands = 1 : i64, tpu.core_type = #tpu.core_type<tc>, window_params = [{transform_indices = @transform_0, window_bounds = array<i64: 256, 128>}, {transform_indices = @transform_1, window_bounds = array<i64: 128, 128>}, {transform_indices = @transform_2, window_bounds = array<i64: 1, 128>}, {transform_indices = @transform_3, window_bounds = array<i64: 1, 128>}, {transform_indices = @transform_4, window_bounds = array<i64: 256, 128>}]} {
    %c0_i32 = arith.constant 0 : i32
    %0 = arith.cmpi eq, %arg2, %c0_i32 : i32
    %1 = arith.extui %0 : i1 to i32
    %c0_i32_0 = arith.constant 0 : i32
    %2 = arith.cmpi ne, %1, %c0_i32_0 : i32
    scf.if %2 {
      %cst_10 = arith.constant 0.000000e+00 : f32
      %12 = vector.broadcast %cst_10 : f32 to vector<256x128xf32>
      %c0_11 = arith.constant 0 : index
      %c0_12 = arith.constant 0 : index
      %13 = vector.load %arg8[%c0_11, %c0_12] : memref<256x128xf32, #tpu.memory_space<vmem>>, vector<256x128xf32>
      tpu.vector_store %arg8[%c0_11, %c0_12], %12 {strides = array<i32>} : memref<256x128xf32, #tpu.memory_space<vmem>>, vector<256x128xf32>,
    } else {
    }
    %c0 = arith.constant 0 : index
    %c0_1 = arith.constant 0 : index
    %3 = vector.load %arg8[%c0, %c0_1] : memref<256x128xf32, #tpu.memory_space<vmem>>, vector<256x128xf32>
    %c0_2 = arith.constant 0 : index
    %c0_3 = arith.constant 0 : index
    %4 = vector.load %arg3[%c0_2, %c0_3] : memref<256x128xbf16, #tpu.memory_space<vmem>>, vector<256x128xbf16>
    %c0_4 = arith.constant 0 : index
    %c0_5 = arith.constant 0 : index
    %5 = vector.load %arg4[%c0_4, %c0_5] : memref<128x128xbf16, #tpu.memory_space<vmem>>, vector<128x128xbf16>
    %cst = arith.constant dense<0.000000e+00> : vector<256x128xf32>
    %6 = tpu.matmul %4, %5, %cst {dimension_numbers = #tpu.dot_dimension_numbers<[1], [0], [0], [1], [0, 0, 1, 1], [], []>} : vector<256x128xbf16>, vector<128x128xbf16>, vector<256x128xf32> -> vector<256x128xf32>
    %7 = arith.addf %3, %6 : vector<256x128xf32>
    %c0_6 = arith.constant 0 : index
    %c0_7 = arith.constant 0 : index
    %8 = vector.load %arg8[%c0_6, %c0_7] : memref<256x128xf32, #tpu.memory_space<vmem>>, vector<256x128xf32>
    tpu.vector_store %arg8[%c0_6, %c0_7], %7 {strides = array<i32>} : memref<256x128xf32, #tpu.memory_space<vmem>>, vector<256x128xf32>,
    %c0_i32_8 = arith.constant 0 : i32
    %9 = arith.cmpi eq, %arg2, %c0_i32_8 : i32
    %10 = arith.extui %9 : i1 to i32
    %c0_i32_9 = arith.constant 0 : i32
    %11 = arith.cmpi ne, %10, %c0_i32_9 : i32
    scf.if %11 {
      %c0_10 = arith.constant 0 : index
      %c0_11 = arith.constant 0 : index
      %12 = vector.load %arg8[%c0_10, %c0_11] : memref<256x128xf32, #tpu.memory_space<vmem>>, vector<256x128xf32>
      %c0_12 = arith.constant 0 : index
      %c0_13 = arith.constant 0 : index
      %13 = vector.load %arg5[%c0_12, %c0_13] : memref<1x128xf32, #tpu.memory_space<vmem>>, vector<1x128xf32>
      %14 = vector.broadcast %13 : vector<1x128xf32> to vector<256x128xf32>
      %15 = arith.mulf %12, %14 : vector<256x128xf32>
      %c0_14 = arith.constant 0 : index
      %c0_15 = arith.constant 0 : index
      %16 = vector.load %arg6[%c0_14, %c0_15] : memref<1x128xf32, #tpu.memory_space<vmem>>, vector<1x128xf32>
      %17 = vector.broadcast %16 : vector<1x128xf32> to vector<256x128xf32>
      %18 = arith.addf %15, %17 : vector<256x128xf32>
      %c0_16 = arith.constant 0 : index
      %c0_17 = arith.constant 0 : index
      %19 = vector.load %arg7[%c0_16, %c0_17] : memref<256x128xf32, #tpu.memory_space<vmem>>, vector<256x128xf32>
      tpu.vector_store %arg7[%c0_16, %c0_17], %18 {strides = array<i32>} : memref<256x128xf32, #tpu.memory_space<vmem>>, vector<256x128xf32>,
    } else {
    }
    return
  }
  func.func @transform_0(%arg0: i32, %arg1: i32, %arg2: i32) -> (i32, i32) {
    %c0_i32 = arith.constant 0 : i32
    return %arg0, %arg2 : i32, i32
  }
  func.func @transform_1(%arg0: i32, %arg1: i32, %arg2: i32) -> (i32, i32) {
    %c0_i32 = arith.constant 0 : i32
    return %arg2, %arg1 : i32, i32
  }
  func.func @transform_2(%arg0: i32, %arg1: i32, %arg2: i32) -> (i32, i32) {
    %c0_i32 = arith.constant 0 : i32
    %c0_i32_0 = arith.constant 0 : i32
    return %c0_i32, %arg1 : i32, i32
  }
  func.func @transform_3(%arg0: i32, %arg1: i32, %arg2: i32) -> (i32, i32) {
    %c0_i32 = arith.constant 0 : i32
    %c0_i32_0 = arith.constant 0 : i32
    return %c0_i32, %arg1 : i32, i32
  }
  func.func @transform_4(%arg0: i32, %arg1: i32, %arg2: i32) -> (i32, i32) {
    %c0_i32 = arith.constant 0 : i32
    return %arg0, %arg1 : i32, i32
  }
}

</mosaic_0001>

<bundles_post_ra>
// kernel: pallas_matmul.1
= control target key start
LH: loop header
LB: loop body
LE: loop exit
PB: predicated region body
PF: predicated region fallthrough
CT: control target
= control target key end

     0   :  { %9 = vsyncpa [#allocation4], 0  ;;  %s1647_s0 = inlined_call_operand.vmem [shape: bf16[512,128], index: 0, kind: input, shape index: {}]   ;;  %s1648_s1 = inlined_call_operand.vmem [shape: bf16[128,128], index: 1, kind: input, shape index: {}]   ;;  %s1649_s2 = inlined_call_operand.vmem [shape: f32[1,128], index: 2, kind: input, shape index: {}]   ;;  %s1650_s3 = inlined_call_operand.vmem [shape: f32[1,128], index: 3, kind: input, shape index: {}]   ;;  %s1651_s4 = inlined_call_operand.hbm [shape: f32[512,128], index: 4, kind: output, shape index: {}]  }
   0x1   :  { %11 = vsyncpa [#allocation4 + $0x1], 0  ;;  %s1378_s15 = smov 0   ;;  %s1380_s16 = smov 0  }
   0x2   :  { %s1382_s17 = smov 0   ;;  %s1384_s18 = smov 0  }
   0x3   :  { %s1386_s19 = smov 0   ;;  %s1388_s20 = smov 0  }
   0x4 LB: > { %s1058_s21 = sadd.s32 4294967295, %s1348_s20   ;;  %s1059_s22 = sadd.s32 4294967294, %s1348_s20   ;;  %s1348_s20 = sphi %s1388_s20, %s17_s20   ;;  %s1344_s19 = sphi %s1386_s19, %s1658_s19   ;;  %s1340_s18 = sphi %s1384_s18, %s1657_s18   ;;  %s1336_s17 = sphi %s1382_s17, %s1656_s17   ;;  %s1332_s16 = sphi %s1380_s16, %s1655_s16   ;;  %s1328_s15 = sphi %s1378_s15, %s1654_s15  }
   0x5   : > { %s36_s23 = sadd.s32 1, %s1344_s19  ;;  %s153_s24 = sadd.s32 1, %s1336_s17 }
   0x6   : > { %p38_p0 = scmp.ge.s32.totalorder %s36_s23, 2  ;;  %p163_p1 = scmp.ne.s32.totalorder %s1336_s17, %s1332_s16 }
   0x7   : > { %p164_p2 = scmp.eq.s32.totalorder %s1058_s21, 1  ;;  %p169_p3 = scmp.ne.s32.totalorder %s1332_s16, %s1328_s15 }
   0x8   : > { %s1660_s23 = smov (%p38_p0, %s36_s23), 0  ;;  %p170_p5 = scmp.eq.s32.totalorder %s1059_s22, 1 }
   0x9   : > { %p1418_p4 = por %p164_p2, %p163_p1  ;;  %s148_s26 = ssub.s32 %s1344_s19, %s1660_s23 }
   0xa   : > { %p1065_p6 = scmp.ge.s32.totalorder %s1348_s20, 1  ;;  %p151_p7 = scmp.eq.s32.totalorder %s148_s26, 0 }
   0xb   : > { %p1425_p8 = por %p170_p5, %p169_p3  ;;  %p224_p9 = scmp.lt.s32.totalorder %s1348_s20, 3 }
   0xc   : > { %s1431_s28 = scalar_select %p151_p7, %s1336_s17, %s153_s24  }
   0xd   : > { %p225_p10 = pnand %p1065_p6, %p224_p9 }
   0xe   : > { %v1246_v0 = vld [vmem:[%s1648_s1] sm:$0xff] (!%p225_p10)   ;;  %s1067_s5 = sshll.u32 (!%p225_p10), %s1340_s18, 5  ;;  %v1247_v1 = vld [vmem:[%s1648_s1 + $0x8] sm:$0xff] (!%p225_p10)   ;;  %v1248_v2 = vld [vmem:[%s1648_s1 + $0x10] sm:$0xff] (!%p225_p10)   ;;  %s264_s8 = sand.u32 (!%p225_p10), 1, %s1332_s16  }
   0xf   : > { %228 = sbr.rel (%p225_p10) target bundleno = 305 (0x131), region = 36  ;;  %p268_p11 = scmp.lt.s32.totalorder (!%p225_p10), %s1067_s5, 63  ;;  %1125 = vmatprep.subr.bf16.mxu0 (!%p225_p10), %v1246_v0  ;;  %1173 = vmatprep.subr.bf16.mxu1 (!%p225_p10), %v1246_v0  ;;  %v1249_v3 = vld [vmem:[%s1648_s1 + $0x18] sm:$0xff] (!%p225_p10)   ;;  %v1250_v6 = vld [vmem:[%s1648_s1 + $0x20] sm:$0xff] (!%p225_p10)   ;;  %v1251_v7 = vld [vmem:[%s1648_s1 + $0x28] sm:$0xff] (!%p225_p10)  }
  0x10   : > { %1126 = vmatpush3.bf16.msra.mxu0 (!%p225_p10), %v1246_v0  ;;  %1181 = vmatpush3.bf16.msra.mxu1 (!%p225_p10), %v1246_v0  ;;  %v1252_v8 = vld [vmem:[%s1648_s1 + $0x30] sm:$0xff] (!%p225_p10)   ;;  %v1253_v9 = vld [vmem:[%s1648_s1 + $0x38] sm:$0xff] (!%p225_p10)   ;;  %v1483_v24 = vld [vmem:[%s1649_s2] ss:$0 sm:$0xff] (!%p225_p10)  ;;  %s1066_s11 = sshll.u32 (!%p225_p10), %s264_s8, 8  ;;  %s1100_s21 = sshll.u32 (!%p225_p10), %s1340_s18, 12 }
  0x11   : > { %1127 = vmatprep.subr.bf16.mxu0 (!%p225_p10), %v1247_v1  ;;  %1174 = vmatprep.subr.bf16.mxu1 (!%p225_p10), %v1247_v1  ;;  %v1490_v26 = vld [vmem:[%s1650_s3] ss:$0 sm:$0xff] (!%p225_p10)  ;;  %s1587_s26 = scalar_lea.hbm (!%p225_p10), %s1651_s4, %s1100_s21  ;;  %s1601_s29 = scalar_lea.sflag (!%p225_p10), [#allocation4], %s264_s8 }
  0x14   : > { %1128 = vmatpush3.bf16.msra.mxu0 (!%p225_p10), %v1247_v1  ;;  %1182 = vmatpush3.bf16.msra.mxu1 (!%p225_p10), %v1247_v1 }
  0x15   : > { %1129 = vmatprep.subr.bf16.mxu0 (!%p225_p10), %v1248_v2  ;;  %1175 = vmatprep.subr.bf16.mxu1 (!%p225_p10), %v1248_v2 }
  0x16   : > { %s1662_s5 = smov (!%p268_p11, %s1067_s5), 63 }
  0x17   : > { %s1068_s10 = sshll.u32 %s1662_s5, 2  ;;  %s1350_s5 = smov [#allocation3]  }
  0x18   : > { %s1446_s13 = scalar_lea.vmem %s1647_s0, %s1068_s10  ;;  %1130 = vmatpush3.bf16.msra.mxu0 %v1248_v2  ;;  %1183 = vmatpush3.bf16.msra.mxu1 %v1248_v2  ;;  %s1274_s6 = sshll.u32 %s1350_s5, 4  ;;  %s1275_s6 = int_to_ptr.vmem [resolvable:$false] %s1274_s6 }
  0x19   : > { %v1254_v4 = vld [vmem:[%s1446_s13] sm:$0xff]   ;;  %1131 = vmatprep.subr.bf16.mxu0 %v1249_v3  ;;  %1176 = vmatprep.subr.bf16.mxu1 %v1249_v3  ;;  %v1256_v10 = vld [vmem:[%s1446_s13 + $0x8] sm:$0xff]   ;;  %v1258_v12 = vld [vmem:[%s1446_s13 + $0x10] sm:$0xff]   ;;  %s1276_s7 = scalar_lea.vmem %s1275_s6, 8192 }
  0x1a   : > { %v1255_v5 = vld [vmem:[%s1446_s13 + $0x40] sm:$0xff]   ;;  %1141 = vmatprep.mubr.bf16.mxu0 %v1254_v4  ;;  %v1257_v11 = vld [vmem:[%s1446_s13 + $0x48] sm:$0xff]   ;;  %v1259_v13 = vld [vmem:[%s1446_s13 + $0x50] sm:$0xff]  }
  0x1b   : > { %1157 = vmatprep.mubr.bf16.mxu1 %v1255_v5  ;;  %v1260_v14 = vld [vmem:[%s1446_s13 + $0x18] sm:$0xff]   ;;  %v1262_v16 = vld [vmem:[%s1446_s13 + $0x20] sm:$0xff]   ;;  %v1264_v18 = vld [vmem:[%s1446_s13 + $0x28] sm:$0xff]  }
  0x1c   : > { %1132 = vmatpush3.bf16.msra.mxu0 %v1249_v3  ;;  %1184 = vmatpush3.bf16.msra.mxu1 %v1249_v3  ;;  %v1261_v15 = vld [vmem:[%s1446_s13 + $0x58] sm:$0xff]   ;;  %v1263_v17 = vld [vmem:[%s1446_s13 + $0x60] sm:$0xff]   ;;  %v1265_v19 = vld [vmem:[%s1446_s13 + $0x68] sm:$0xff]  }
  0x1d   : > { %1133 = vmatprep.subr.bf16.mxu0 %v1250_v6  ;;  %1177 = vmatprep.subr.bf16.mxu1 %v1250_v6  ;;  %v1266_v20 = vld [vmem:[%s1446_s13 + $0x30] sm:$0xff]   ;;  %v1268_v22 = vld [vmem:[%s1446_s13 + $0x38] sm:$0xff]  }
  0x1e   : > { %v1267_v21 = vld [vmem:[%s1446_s13 + $0x70] sm:$0xff]   ;;  %v1269_v23 = vld [vmem:[%s1446_s13 + $0x78] sm:$0xff]   ;;  %s1504_s13 = scalar_lea.vmem [#allocation3], %s1066_s11 }
  0x1f   : > { %s938_s22 = sshll.u32 %s1504_s13, 4  ;;  %s1589_s22 = int_to_ptr.vmem [resolvable:$true] %s938_s22 }
  0x20   : > { %1134 = vmatpush3.bf16.msra.mxu0 %v1250_v6  ;;  %1185 = vmatpush3.bf16.msra.mxu1 %v1250_v6  ;;  %s1270_s30 = scalar_lea.vmem %s1589_s22, 4096  ;;  %p1277_p1 = scmp.lt.s32.totalorder %s1589_s22, %s1275_s6 }
  0x21   : > { %1135 = vmatprep.subr.bf16.mxu0 %v1251_v7  ;;  %1178 = vmatprep.subr.bf16.mxu1 %v1251_v7  ;;  %p1271_p12 = scmp.ne.s32.totalorder %s1589_s22, %s1270_s30  ;;  %p1278_p2 = scmp.lt.s32.totalorder %s1276_s7, %s1270_s30 }
  0x23   : > { %p1272_p13 = pnand %p1271_p12, %p1418_p4  ;;  %p1279_p3 = por %p1278_p2, %p1277_p1 }
  0x24   : > { %1136 = vmatpush3.bf16.msra.mxu0 %v1251_v7  ;;  %1186 = vmatpush3.bf16.msra.mxu1 %v1251_v7 }
  0x25   : > { %1137 = vmatprep.subr.bf16.mxu0 %v1252_v8  ;;  %1179 = vmatprep.subr.bf16.mxu1 %v1252_v8  ;;  %p1273_p0 = pneg %p1272_p13 }
  0x27   : > { %p1280_p5 = pnand %p1279_p3, %p1273_p0 }
  0x28   : > { %1138 = vmatpush3.bf16.msra.mxu0 %v1252_v8  ;;  %1187 = vmatpush3.bf16.msra.mxu1 %v1252_v8 }
  0x29   : > { %1139 = vmatprep.subr.bf16.mxu0 %v1253_v9  ;;  %1180 = vmatprep.subr.bf16.mxu1 %v1253_v9 }
  0x2c   : > { %1140 = vmatpush3.bf16.msra.mxu0 %v1253_v9  ;;  %1188 = vmatpush3.bf16.msra.mxu1 %v1253_v9 }
  0x2f   : > { %1142 = vmatmul.mubr.bf16.vlgmr.msra.gmra.mrb[0].mxu0 %v1256_v10  ;;  %1158 = vmatmul.mubr.bf16.vlgmr.msra.gmra.mrb[0].mxu1 %v1257_v11 }
  0x30   : > { %1145 = vmatprep.mubr.bf16.mxu0 %v1258_v12  ;;  %1161 = vmatprep.mubr.bf16.mxu1 %v1259_v13 }
  0x37   : > { %1146 = vmatmul.mubr.bf16.gmra.mrb[4].mxu0 %v1260_v14  ;;  %1162 = vmatmul.mubr.bf16.gmra.mrb[4].mxu1 %v1261_v15 }
  0x38   : > { %1149 = vmatprep.mubr.bf16.mxu0 %v1262_v16  ;;  %1165 = vmatprep.mubr.bf16.mxu1 %v1263_v17 }
  0x3f   : > { %1150 = vmatmul.mubr.bf16.gmra.mrb[8].mxu0 %v1264_v18  ;;  %1166 = vmatmul.mubr.bf16.gmra.mrb[8].mxu1 %v1265_v19 }
  0x40   : > { %1153 = vmatprep.mubr.bf16.mxu0 %v1266_v20  ;;  %1169 = vmatprep.mubr.bf16.mxu1 %v1267_v21 }
  0x47   : > { %1154 = vmatmul.mubr.bf16.gmra.mrb[12].mxu0 %v1268_v22  ;;  %1170 = vmatmul.mubr.bf16.gmra.mrb[12].mxu1 %v1269_v23 }
 0x102   : > { %v1143_v25 = vpop.f32.mrb[0].mxu0  ;;  %v1159_v27 = vpop.f32.mrb[0].mxu1 }
 0x103   : > { %v822_v28 = vmul.f32 %v1143_v25, %v1483_v24  ;;  %v838_v29 = vmul.f32 %v1159_v27, %v1483_v24  ;;  %v587_v30 = vpop.f32.mrb[1].mxu0  ;;  %v651_v31 = vpop.f32.mrb[1].mxu1 }
 0x104   : > { %v820_v32 = vmul.f32 %v1483_v24, %v587_v30  ;;  %v836_v33 = vmul.f32 %v1483_v24, %v651_v31  ;;  %v1144_v34 = vpop.f32.mrb[2].mxu0  ;;  %v1160_v35 = vpop.f32.mrb[2].mxu1 }
 0x105   : > { %v861_v36 = vadd.f32 %v1490_v26, %v822_v28  ;;  %v877_v37 = vadd.f32 %v1490_v26, %v838_v29  ;;  %v823_v38 = vmul.f32 %v1144_v34, %v1483_v24  ;;  %v839_v39 = vmul.f32 %v1160_v35, %v1483_v24  ;;  %v590_v40 = vpop.f32.mrb[3].mxu0  ;;  %v654_v41 = vpop.f32.mrb[3].mxu1 }
 0x106   : > { %v859_v42 = vadd.f32 %v1490_v26, %v820_v32  ;;  %v875_v43 = vadd.f32 %v1490_v26, %v836_v33  ;;  %v821_v44 = vmul.f32 %v1483_v24, %v590_v40  ;;  %v837_v45 = vmul.f32 %v1483_v24, %v654_v41 }
 0x107   : > { %893 = vst [vmem:[%s1504_s13 + $0x10] sm:$0xff] %v861_v36  ;;  %909 = vst [vmem:[%s1504_s13 + $0x90] sm:$0xff] %v877_v37  ;;  %v862_v46 = vadd.f32 %v1490_v26, %v823_v38  ;;  %v878_v47 = vadd.f32 %v1490_v26, %v839_v39 }
 0x108   : > { %891 = vst [vmem:[%s1504_s13] sm:$0xff] %v859_v42  ;;  %907 = vst [vmem:[%s1504_s13 + $0x80] sm:$0xff] %v875_v43  ;;  %v860_v48 = vadd.f32 %v1490_v26, %v821_v44  ;;  %v876_v49 = vadd.f32 %v1490_v26, %v837_v45 }
 0x109   : > { %894 = vst [vmem:[%s1504_s13 + $0x18] sm:$0xff] %v862_v46  ;;  %910 = vst [vmem:[%s1504_s13 + $0x98] sm:$0xff] %v878_v47 }
 0x10a   : > { %892 = vst [vmem:[%s1504_s13 + $0x8] sm:$0xff] %v860_v48  ;;  %908 = vst [vmem:[%s1504_s13 + $0x88] sm:$0xff] %v876_v49  ;;  %v1147_v50 = vpop.f32.mrb[4].mxu0  ;;  %v1163_v51 = vpop.f32.mrb[4].mxu1 }
 0x10b   : > { %v826_v52 = vmul.f32 %v1147_v50, %v1483_v24  ;;  %v842_v53 = vmul.f32 %v1163_v51, %v1483_v24  ;;  %v603_v54 = vpop.f32.mrb[5].mxu0  ;;  %v667_v55 = vpop.f32.mrb[5].mxu1 }
 0x10c   : > { %v824_v56 = vmul.f32 %v1483_v24, %v603_v54  ;;  %v840_v57 = vmul.f32 %v1483_v24, %v667_v55  ;;  %v1148_v58 = vpop.f32.mrb[6].mxu0  ;;  %v1164_v59 = vpop.f32.mrb[6].mxu1 }
 0x10d   : > { %v865_v60 = vadd.f32 %v1490_v26, %v826_v52  ;;  %v881_v61 = vadd.f32 %v1490_v26, %v842_v53  ;;  %v827_v62 = vmul.f32 %v1148_v58, %v1483_v24  ;;  %v843_v63 = vmul.f32 %v1164_v59, %v1483_v24  ;;  %v606_v0 = vpop.f32.mrb[7].mxu0  ;;  %v670_v1 = vpop.f32.mrb[7].mxu1 }
 0x10e   : > { %v863_v2 = vadd.f32 %v1490_v26, %v824_v56  ;;  %v879_v3 = vadd.f32 %v1490_v26, %v840_v57  ;;  %v825_v4 = vmul.f32 %v1483_v24, %v606_v0  ;;  %v841_v5 = vmul.f32 %v1483_v24, %v670_v1 }
 0x10f   : > { %897 = vst [vmem:[%s1504_s13 + $0x30] sm:$0xff] %v865_v60  ;;  %913 = vst [vmem:[%s1504_s13 + $0xb0] sm:$0xff] %v881_v61  ;;  %v866_v6 = vadd.f32 %v1490_v26, %v827_v62  ;;  %v882_v7 = vadd.f32 %v1490_v26, %v843_v63 }
 0x110   : > { %895 = vst [vmem:[%s1504_s13 + $0x20] sm:$0xff] %v863_v2  ;;  %911 = vst [vmem:[%s1504_s13 + $0xa0] sm:$0xff] %v879_v3  ;;  %v864_v8 = vadd.f32 %v1490_v26, %v825_v4  ;;  %v880_v9 = vadd.f32 %v1490_v26, %v841_v5 }
 0x111   : > { %898 = vst [vmem:[%s1504_s13 + $0x38] sm:$0xff] %v866_v6  ;;  %914 = vst [vmem:[%s1504_s13 + $0xb8] sm:$0xff] %v882_v7 }
 0x112   : > { %896 = vst [vmem:[%s1504_s13 + $0x28] sm:$0xff] %v864_v8  ;;  %912 = vst [vmem:[%s1504_s13 + $0xa8] sm:$0xff] %v880_v9  ;;  %v1151_v10 = vpop.f32.mrb[8].mxu0  ;;  %v1167_v11 = vpop.f32.mrb[8].mxu1 }
 0x113   : > { %v830_v12 = vmul.f32 %v1151_v10, %v1483_v24  ;;  %v846_v13 = vmul.f32 %v1167_v11, %v1483_v24  ;;  %v619_v14 = vpop.f32.mrb[9].mxu0  ;;  %v683_v15 = vpop.f32.mrb[9].mxu1 }
 0x114   : > { %v828_v16 = vmul.f32 %v1483_v24, %v619_v14  ;;  %v844_v17 = vmul.f32 %v1483_v24, %v683_v15  ;;  %v1152_v18 = vpop.f32.mrb[10].mxu0  ;;  %v1168_v19 = vpop.f32.mrb[10].mxu1 }
 0x115   : > { %v869_v20 = vadd.f32 %v1490_v26, %v830_v12  ;;  %v885_v21 = vadd.f32 %v1490_v26, %v846_v13  ;;  %v831_v22 = vmul.f32 %v1152_v18, %v1483_v24  ;;  %v847_v23 = vmul.f32 %v1168_v19, %v1483_v24  ;;  %v622_v25 = vpop.f32.mrb[11].mxu0  ;;  %v686_v27 = vpop.f32.mrb[11].mxu1 }
 0x116   : > { %v867_v28 = vadd.f32 %v1490_v26, %v828_v16  ;;  %v883_v29 = vadd.f32 %v1490_v26, %v844_v17  ;;  %v829_v30 = vmul.f32 %v1483_v24, %v622_v25  ;;  %v845_v31 = vmul.f32 %v1483_v24, %v686_v27 }
 0x117   : > { %901 = vst [vmem:[%s1504_s13 + $0x50] sm:$0xff] %v869_v20  ;;  %917 = vst [vmem:[%s1504_s13 + $0xd0] sm:$0xff] %v885_v21  ;;  %v870_v32 = vadd.f32 %v1490_v26, %v831_v22  ;;  %v886_v33 = vadd.f32 %v1490_v26, %v847_v23 }
 0x118   : > { %899 = vst [vmem:[%s1504_s13 + $0x40] sm:$0xff] %v867_v28  ;;  %915 = vst [vmem:[%s1504_s13 + $0xc0] sm:$0xff] %v883_v29  ;;  %v868_v34 = vadd.f32 %v1490_v26, %v829_v30  ;;  %v884_v35 = vadd.f32 %v1490_v26, %v845_v31 }
 0x119   : > { %902 = vst [vmem:[%s1504_s13 + $0x58] sm:$0xff] %v870_v32  ;;  %918 = vst [vmem:[%s1504_s13 + $0xd8] sm:$0xff] %v886_v33 }
 0x11a   : > { %900 = vst [vmem:[%s1504_s13 + $0x48] sm:$0xff] %v868_v34  ;;  %916 = vst [vmem:[%s1504_s13 + $0xc8] sm:$0xff] %v884_v35  ;;  %v1155_v36 = vpop.f32.mrb[12].mxu0  ;;  %v1171_v37 = vpop.f32.mrb[12].mxu1 }
 0x11b   : > { %v834_v38 = vmul.f32 %v1155_v36, %v1483_v24  ;;  %v850_v39 = vmul.f32 %v1171_v37, %v1483_v24  ;;  %v635_v40 = vpop.f32.mrb[13].mxu0  ;;  %v699_v41 = vpop.f32.mrb[13].mxu1 }
 0x11c   : > { %v832_v42 = vmul.f32 %v1483_v24, %v635_v40  ;;  %v848_v43 = vmul.f32 %v1483_v24, %v699_v41  ;;  %v1156_v44 = vpop.f32.mrb[14].mxu0  ;;  %v1172_v45 = vpop.f32.mrb[14].mxu1 }
 0x11d   : > { %v873_v46 = vadd.f32 %v1490_v26, %v834_v38  ;;  %v889_v47 = vadd.f32 %v1490_v26, %v850_v39  ;;  %v835_v48 = vmul.f32 %v1156_v44, %v1483_v24  ;;  %v851_v49 = vmul.f32 %v1172_v45, %v1483_v24  ;;  %v638_v50 = vpop.f32.mrb[15].mxu0  ;;  %v702_v51 = vpop.f32.mrb[15].mxu1 }
 0x11e   : > { %v871_v52 = vadd.f32 %v1490_v26, %v832_v42  ;;  %v887_v53 = vadd.f32 %v1490_v26, %v848_v43  ;;  %v833_v54 = vmul.f32 %v1483_v24, %v638_v50  ;;  %v849_v55 = vmul.f32 %v1483_v24, %v702_v51 }
 0x11f   : > { %905 = vst [vmem:[%s1504_s13 + $0x70] sm:$0xff] %v873_v46  ;;  %921 = vst [vmem:[%s1504_s13 + $0xf0] sm:$0xff] %v889_v47  ;;  %v874_v56 = vadd.f32 %v1490_v26, %v835_v48  ;;  %v890_v57 = vadd.f32 %v1490_v26, %v851_v49 }
 0x120   : > { %903 = vst [vmem:[%s1504_s13 + $0x60] sm:$0xff] %v871_v52  ;;  %919 = vst [vmem:[%s1504_s13 + $0xe0] sm:$0xff] %v887_v53  ;;  %v872_v24 = vadd.f32 %v1490_v26, %v833_v54  ;;  %v888_v58 = vadd.f32 %v1490_v26, %v849_v55 }
 0x121   : > { %906 = vst [vmem:[%s1504_s13 + $0x78] sm:$0xff] %v874_v56  ;;  %922 = vst [vmem:[%s1504_s13 + $0xf8] sm:$0xff] %v890_v57 }
 0x122   : > { %904 = vst [vmem:[%s1504_s13 + $0x68] sm:$0xff] %v872_v24  ;;  %920 = vst [vmem:[%s1504_s13 + $0xe8] sm:$0xff] %v888_v58 }
 0x123   : > { %1283 = shalt.err (!%p1280_p5)
}
 0x124   : > { %s1284_s8 = scalar_lea.hbm %s1587_s26, 4096  ;;  %s1288_s11 = scalar_lea.hbm %s1651_s4, 8192 }
 0x125   : > { %p1285_p6 = scmp.ne.s32.totalorder %s1587_s26, %s1284_s8  ;;  %p1289_p10 = scmp.lt.u32.totalorder %s1587_s26, %s1651_s4 }
 0x126   : > { %p1290_p11 = scmp.lt.u32.totalorder %s1288_s11, %s1284_s8  ;;  %p1292_p13 = scmp.lt.u32.totalorder %s1284_s8, %s1587_s26 }
 0x127   : > { %p1286_p7 = pnand %p1285_p6, %p1418_p4 }
 0x128   : > { %p1291_p12 = por %p1290_p11, %p1289_p10 }
 0x129   : > { %p1287_p9 = pneg %p1286_p7 }
 0x12a   : > { %p1293_p0 = por %p1292_p13, %p1291_p12 }
 0x12c   : > { %p1294_p1 = pnand %p1293_p0, %p1287_p9 }
 0x12e   : > { %1297 = shalt.err (!%p1294_p1)
}
 0x12f   : > { %s1351_s13 = smov 128   ;;  %s1352_s21 = smov 8  }
 0x130   : > { %1189 = dma.vmem_to_hbm [thread:$0]  (%p1418_p4), %s1589_s22, 4096, %s1587_s26, %s1601_s29, %s1351_s13, %s1351_s13, %s1352_s21  }
 0x131 PF: > { %p1195_p2 = scmp.ge.s32.totalorder %s1348_s20, 2  ;;  %s953_s18 = sand.u32 1, %s1328_s15  }
 0x132   : > { %s954_s24 = scalar_lea.sflag [#allocation4], %s953_s18 }
 0x133   : > { %p1192_p3 = pnand %p1195_p2, %p1425_p8 }
 0x135   : > { %1323 = dma.done.wait (!%p1192_p3), %s954_s24, 4096  }
 0x136   : > { %1325 = vsyncadd (!%p1192_p3), %s954_s24, 4294963200  ;;  %s17_s20 = sadd.s32 1, %s1348_s20   ;;  %s1654_s15 = smov %s1332_s16 }
 0x137   : > { %p14_p5 = scmp.ge.s32.totalorder %s17_s20, 4   ;;  %s1655_s16 = smov %s1336_s17 }
 0x138   : > { %s1656_s17 = smov %s1431_s28  ;;  %s1657_s18 = smov %s1344_s19 }
 0x139   : > { %s1658_s19 = smov %s1660_s23  ;;  %16 = sbr.rel (!%p14_p5) target bundleno = 4 (0x4), region = 88 }
 0x140   :  { %959 = vsyncpa [#allocation4], 1 }
 0x141   :  { %961 = vsyncpa [#allocation4 + $0x1], 1 }

</bundles_post_ra>
